<compile_context>
chip_gen: v7x
topology: tpu7x:2x2x1
jax: 0.10.0
libtpu: 0.0.40
codegen_flags: <defaults>
</compile_context>

<pallas_src>
import jax
import jax.numpy as jnp
from jax.experimental import pallas as pl
from jax.experimental.pallas import tpu as pltpu


def _copy_kernel(x_ref, o_ref):
    # The chomp is expressed entirely through the BlockSpecs (both refs have
    # identical block shapes over the leading L_out columns), so the body is
    # a straight copy handled by DMA/VPU.
    o_ref[...] = x_ref[...]


def _round_up(v: int, m: int) -> int:
    return ((v + m - 1) // m) * m


def _pick_lane_tile(l_out: int, lane_budget: int) -> int:
    """Largest multiple-of-128 lane tile <= lane_budget whose final partial
    tile is either empty or at least half full (avoids mostly-padded tails)."""
    max_tl = max(128, min(lane_budget, (l_out // 128) * 128))
    for tl in range(max_tl, 127, -128):
        rem = l_out % tl
        if rem == 0 or rem >= tl // 2:
            return tl
    return max_tl


def chomp1d(x: jax.Array, chomp_size: int, *, tile_rows: int = 512,
            tile_lanes: int = 2048) -> jax.Array:
    """Remove `chomp_size` elements from the end of the last axis of (N, C, L)."""
    n, c, l = x.shape
    if chomp_size < 0:
        raise ValueError("chomp_size must be non-negative")
    if chomp_size == 0:
        # NOTE: literal PyTorch `x[:, :, :-0]` is empty, but Chomp1d in a TCN
        # is always built with chomp_size > 0; treat 0 as a no-op here.
        return x
    l_out = l - chomp_size
    if l_out <= 0:
        raise ValueError("chomp_size must be smaller than the sequence length")

    if l_out < 128:
        # Sub-lane-width output: every Pallas store would be a masked vst.msk
        # with sub-512B HBM bursts. Per perf review, hand this to XLA's slice.
        return x[:, :, :l_out]

    rows = n * c
    # NOTE: this reshape is only free if x is contiguous in NCL layout.
    x2 = x.reshape(rows, l)

    # ---- tile selection -------------------------------------------------
    tr = rows if rows <= tile_rows else tile_rows          # full dim or mult-of-8
    tl = _pick_lane_tile(l_out, tile_lanes)                # multiple of 128

    grid_r = pl.cdiv(rows, tr)
    grid_l = pl.cdiv(l_out, tl)

    # Ensure at least one parallel axis has >= 2 blocks so the work can shard
    # across both TensorCores on v7x.
    if grid_r == 1 and grid_l == 1:
        if rows >= 16:
            tr = _round_up((rows + 1) // 2, 8)
            grid_r = pl.cdiv(rows, tr)
        elif l_out >= 256:
            tl = _round_up((l_out + 1) // 2, 128)
            grid_l = pl.cdiv(l_out, tl)

    # ---- VMEM budget: in + out, each double-buffered => 4 live tile buffers.
    itemsize = jnp.dtype(x.dtype).itemsize
    tile_bytes = tr * tl * itemsize
    vmem_limit = int(min(max(4 * tile_bytes + (2 << 20), 16 << 20), 48 << 20))

    y2 = pl.pallas_call(
        _copy_kernel,
        out_shape=jax.ShapeDtypeStruct((rows, l_out), x.dtype),
        grid=(grid_r, grid_l),
        in_specs=[pl.BlockSpec((tr, tl), lambda i, j: (i, j))],
        out_specs=pl.BlockSpec((tr, tl), lambda i, j: (i, j)),
        compiler_params=pltpu.CompilerParams(
            dimension_semantics=("parallel", "parallel"),
            vmem_limit_bytes=vmem_limit,
        ),
    )(x2)

    return y2.reshape(n, c, l_out)


if __name__ == "__main__":
    key = jax.random.PRNGKey(0)
    k1, k2, k3 = jax.random.split(key, 3)

    # 1) Small TCN-like shape on the lane-dense Pallas path, with a masked
    #    final lane tile (l_out=296, tl=256 -> last block edge-padded/masked).
    x1 = jax.random.normal(k1, (2, 4, 300), dtype=jnp.float32)
    y1 = chomp1d(x1, 4)
    jax.block_until_ready(y1)
    assert y1.shape == (2, 4, 296)
    assert y1.dtype == x1.dtype
    assert jnp.array_equal(y1, x1[:, :, :-4])

    # 2) Longer sequence / more rows, bf16, multi-block lane grid.
    x2 = jax.random.normal(k2, (4, 16, 2500), dtype=jnp.bfloat16)
    y2 = chomp1d(x2, 7)
    jax.block_until_ready(y2)
    assert jnp.array_equal(y2, x2[:, :, :-7])

    # 3) Tiny-L case consistent with the unit-test shape; routed to XLA slice
    #    (sub-128-lane Pallas stores would all be masked).
    x3 = jax.random.normal(k3, (2, 4, 16), dtype=jnp.float32)
    y3 = chomp1d(x3, 3)
    jax.block_until_ready(y3)
    assert y3.shape == (2, 4, 13)
    assert jnp.array_equal(y3, x3[:, :, :-3])

    print("KERNEL_OK")
</pallas_src>

<mosaic_0001>
module attributes {stable_mosaic.version = 11 : i64} {
  func.func @_copy_kernel(%arg0: i32, %arg1: i32, %arg2: memref<8x256xf32, #tpu.memory_space<vmem>>, %arg3: memref<8x256xf32, #tpu.memory_space<vmem>>) attributes {dimension_semantics = [#tpu.dimension_semantics<parallel>, #tpu.dimension_semantics<parallel>], iteration_bounds = array<i64: 1, 2>, scalar_prefetch = 0 : i64, scratch_operands = 0 : i64, tpu.core_type = #tpu.core_type<tc>, window_params = [{transform_indices = @transform_0, window_bounds = array<i64: 8, 256>}, {transform_indices = @transform_1, window_bounds = array<i64: 8, 256>}]} {
    %c0 = arith.constant 0 : index
    %c0_0 = arith.constant 0 : index
    %0 = vector.load %arg2[%c0, %c0_0] : memref<8x256xf32, #tpu.memory_space<vmem>>, vector<8x256xf32>
    %c0_1 = arith.constant 0 : index
    %c0_2 = arith.constant 0 : index
    %1 = vector.load %arg3[%c0_1, %c0_2] : memref<8x256xf32, #tpu.memory_space<vmem>>, vector<8x256xf32>
    tpu.vector_store %arg3[%c0_1, %c0_2], %0 {strides = array<i32>} : memref<8x256xf32, #tpu.memory_space<vmem>>, vector<8x256xf32>,
    return
  }
  func.func @transform_0(%arg0: i32, %arg1: i32) -> (i32, i32) {
    %c0_i32 = arith.constant 0 : i32
    return %arg0, %arg1 : i32, i32
  }
  func.func @transform_1(%arg0: i32, %arg1: i32) -> (i32, i32) {
    %c0_i32 = arith.constant 0 : i32
    return %arg0, %arg1 : i32, i32
  }
}

</mosaic_0001>

<bundles_post_ra>
// kernel: tpu_custom_call.1
= control target key start
LH: loop header
LB: loop body
LE: loop exit
PB: predicated region body
PF: predicated region fallthrough
CT: control target
= control target key end

     0   :  { %6 = vsyncpa [#allocation3], 0  ;;  %s651_s0 = inlined_call_operand.hbm [shape: f32[8,300], index: 0, kind: input, shape index: {}]   ;;  %s652_s1 = inlined_call_operand.hbm [shape: f32[8,296], index: 1, kind: output, shape index: {}]  }
   0x1   :  { %8 = vsyncpa [#allocation3 + $0x1], 0 }
   0x2   :  { %9 = vsyncpa [#allocation4], 0 }
   0x3   :  { %11 = vsyncpa [#allocation4 + $0x1], 0  ;;  %s482_s6 = smov 0   ;;  %s484_s7 = smov 0  }
   0x4   :  { %s486_s8 = smov 0   ;;  %s488_s9 = smov 0  }
   0x5   :  { %s490_s10 = smov 0   ;;  %s492_s11 = smov 0  }
   0x6 LB: > { %s278_s12 = sadd.s32 4294967295, %s468_s11   ;;  %s279_s13 = sadd.s32 4294967294, %s468_s11   ;;  %s468_s11 = sphi %s492_s11, %s17_s11   ;;  %s464_s10 = sphi %s490_s10, %s666_s10   ;;  %s460_s9 = sphi %s488_s9, %s665_s9   ;;  %s456_s8 = sphi %s486_s8, %s664_s8   ;;  %s452_s7 = sphi %s484_s7, %s663_s7   ;;  %s448_s6 = sphi %s482_s6, %s662_s6  }
   0x7   : > { %s26_s14 = sadd.s32 1, %s464_s10  ;;  %s38_s15 = sadd.s32 1, %s456_s8 }
   0x8   : > { %p27_p0 = scmp.ge.s32.totalorder %s26_s14, 2  ;;  %p45_p1 = scmp.ne.s32.totalorder %s456_s8, %s452_s7 }
   0x9   : > { %p46_p2 = scmp.eq.s32.totalorder %s468_s11, 0  ;;  %p51_p3 = scmp.ne.s32.totalorder %s452_s7, %s448_s6 }
   0xa   : > { %s668_s14 = smov (%p27_p0, %s26_s14), 0  ;;  %p52_p5 = scmp.eq.s32.totalorder %s278_s12, 0 }
   0xb   : > { %p47_p4 = por %p46_p2, %p45_p1  ;;  %s34_s16 = ssub.s32 %s464_s10, %s668_s14 }
   0xc   : > { %p77_p6 = scmp.eq.s32.totalorder %s278_s12, 1  ;;  %p36_p7 = scmp.eq.s32.totalorder %s34_s16, 0 }
   0xd   : > { %p525_p8 = por %p52_p5, %p51_p3  ;;  %p83_p10 = scmp.eq.s32.totalorder %s279_s13, 1 }
   0xe   : > { %p529_p9 = por %p77_p6, %p45_p1  ;;  %p653_p12 = scmp.ge.s32.totalorder %s468_s11, 2 }
   0xf   : > { %s655_s17 = scalar_select %p525_p8, 1, 0 }
  0x10   : > { %s656_s18 = scalar_select %p529_p9, 1, 0 }
  0x11   : > { %s534_s19 = scalar_select %p36_p7, %s456_s8, %s38_s15  }
  0x12   : > { %p536_p11 = por %p83_p10, %p51_p3  ;;  %99 = sbr.rel (%p653_p12) target bundleno = 59 (0x3b), region = 16 }
  0x14   : > { %s657_s20 = scalar_select %p536_p11, 1, 0 }
  0x19   : > { %102 = sbr.rel (!%p47_p4) target bundleno = 59 (0x3b), region = 20  ;;  %s103_s21 = sand.u32 (%p47_p4), 1, %s456_s8  }
  0x1a   : > { %s283_s22 = sshll.u32 (%p47_p4), %s464_s10, 1  ;;  %s282_s23 = sshll.u32 (%p47_p4), %s103_s21, 4 }
  0x1b   : > { %s109_s24 = ssub.s32 (%p47_p4), 3, %s283_s22  ;;  %s548_s27 = scalar_lea.sflag (%p47_p4), [#allocation3], %s103_s21 }
  0x1c   : > { %p110_p13 = scmp.lt.s32.totalorder (%p47_p4), %s109_s24, 2  ;;  %s107_s28 = scalar_lea.vmem (%p47_p4), [#allocation2], %s282_s23 }
  0x20   : > { %s670_s24 = smov (!%p110_p13, %s109_s24), 2 }
  0x21   : > { %s545_s25 = sshll.u32 %s670_s24, 7 }
  0x22   : > { %s114_s26 = ssub.s32 256, %s545_s25 }
  0x23   : > { %115 = vsyncadd %s548_s27, %s114_s26  ;;  %p285_p0 = scmp.ne.s32.totalorder %s545_s25, 0  ;;  %s301_s29 = sshll.u32 %s464_s10, 8 }
  0x24   : > { %s556_s3 = scalar_lea.hbm %s651_s0, %s301_s29  ;;  %s123_s4 = sshll.u32 %s107_s28, 4  ;;  %s124_s4 = int_to_ptr.vmem [resolvable:$true] %s123_s4 }
  0x25   : > { %s358_s5 = scalar_lea.hbm %s556_s3, %s545_s25  ;;  %s362_s15 = scalar_lea.hbm %s651_s0, 384 }
  0x26   : > { %p359_p1 = scmp.ne.s32.totalorder %s556_s3, %s358_s5  ;;  %p363_p4 = scmp.lt.u32.totalorder %s556_s3, %s651_s0 }
  0x27   : > { %p364_p5 = scmp.lt.u32.totalorder %s362_s15, %s358_s5  ;;  %p366_p7 = scmp.lt.u32.totalorder %s358_s5, %s556_s3 }
  0x28   : > { %p360_p2 = pnand %p359_p1, %p285_p0 }
  0x29   : > { %p365_p6 = por %p364_p5, %p363_p4 }
  0x2a   : > { %p361_p3 = pneg %p360_p2 }
  0x2b   : > { %p367_p10 = por %p366_p7, %p365_p6 }
  0x2d   : > { %p368_p13 = pnand %p367_p10, %p361_p3 }
  0x2f   : > { %371 = shalt.err (!%p368_p13)
}
  0x30   : > { %s372_s22 = scalar_lea.vmem %s124_s4, %s545_s25  ;;  %s470_s23 = smov [#allocation2]  }
  0x31   : > { %p373_p12 = scmp.ne.s32.totalorder %s124_s4, %s372_s22  ;;  %s376_s24 = sshll.u32 %s470_s23, 4  ;;  %s377_s24 = int_to_ptr.vmem [resolvable:$false] %s376_s24 }
  0x32   : > { %s378_s26 = scalar_lea.vmem %s377_s24, 512  ;;  %p379_p11 = scmp.lt.s32.totalorder %s124_s4, %s377_s24 }
  0x33   : > { %p374_p1 = pnand %p373_p12, %p285_p0  ;;  %p380_p9 = scmp.lt.s32.totalorder %s378_s26, %s372_s22 }
  0x35   : > { %p375_p2 = pneg %p374_p1  ;;  %p381_p8 = por %p380_p9, %p379_p11 }
  0x37   : > { %p382_p4 = pnand %p381_p8, %p375_p2 }
  0x39   : > { %385 = shalt.err (!%p382_p4)
}
  0x3a   : > { %126 = dma.hbm_to_vmem [thread:$0]  (%p285_p0), %s556_s3, %s545_s25, %s124_s4, %s548_s27  }
  0x3b PF: > { %p289_p12 = scmp.ge.s32.totalorder %s468_s11, 1  ;;  %p128_p3 = scmp.lt.s32.totalorder %s468_s11, 3 }
  0x3d   : > { %p129_p5 = pnand %p289_p12, %p128_p3 }
  0x3e   : > { %s582_s28 = sand.u32 (!%p129_p5), 1, %s452_s7   ;;  %p658_p8 = scmp.ne.s32.totalorder (!%p129_p5), %s655_s17, 0 }
  0x3f   : > { %132 = sbr.rel (%p129_p5) target bundleno = 108 (0x6c), region = 24  ;;  %s290_s29 = sshll.u32 (!%p129_p5), %s582_s28, 4 }
  0x40   : > { %s135_s30 = scalar_lea.sflag (!%p129_p5), [#allocation3], %s582_s28  ;;  %s138_s2 = scalar_lea.vmem (!%p129_p5), [#allocation2], %s290_s29 }
  0x46   : > { %439 = dma.done.wait (%p658_p8), %s135_s30, 256  }
  0x47   : > { %441 = vsyncadd (%p658_p8), %s135_s30, 4294967040  ;;  %v167_v0 = vld [vmem:[%s138_s2] sm:$0xff]  ;;  %v168_v1 = vld [vmem:[%s138_s2 + $0x8] sm:$0xff]  ;;  %s156_s25 = scalar_lea.vmem [#allocation5], %s290_s29  ;;  %s172_s27 = scalar_lea.sflag [#allocation4], %s582_s28 }
  0x48   : > { %169 = vst [vmem:[%s156_s25] sm:$0xff] %v167_v0  ;;  %170 = vst [vmem:[%s156_s25 + $0x8] sm:$0xff] %v168_v1  ;;  %p659_p9 = scmp.ne.s32.totalorder %s656_s18, 0 }
  0x49   : > { %s293_s3 = sshll.u32 (%p659_p9), %s460_s9, 1 }
  0x4a   : > { %178 = sbr.rel (!%p659_p9) target bundleno = 108 (0x6c), region = 32  ;;  %s180_s4 = ssub.s32 (%p659_p9), 3, %s293_s3 }
  0x4b   : > { %p181_p11 = scmp.lt.s32.totalorder (%p659_p9), %s180_s4, 2 }
  0x51   : > { %s672_s4 = smov (!%p181_p11, %s180_s4), 2 }
  0x52   : > { %s594_s5 = sshll.u32 %s672_s4, 7 }
  0x53   : > { %s185_s17 = ssub.s32 256, %s594_s5 }
  0x54   : > { %186 = vsyncadd %s172_s27, %s185_s17  ;;  %p295_p0 = scmp.ne.s32.totalorder %s594_s5, 0  ;;  %s302_s12 = sshll.u32 %s460_s9, 8 }
  0x55   : > { %s604_s15 = scalar_lea.hbm %s652_s1, %s302_s12  ;;  %s194_s16 = sshll.u32 %s156_s25, 4  ;;  %s195_s16 = int_to_ptr.vmem [resolvable:$true] %s194_s16 }
  0x56   : > { %s386_s21 = scalar_lea.vmem %s195_s16, %s594_s5  ;;  %s471_s22 = smov [#allocation5]  }
  0x57   : > { %p387_p6 = scmp.ne.s32.totalorder %s195_s16, %s386_s21  ;;  %s390_s23 = sshll.u32 %s471_s22, 4  ;;  %s391_s23 = int_to_ptr.vmem [resolvable:$false] %s390_s23 }
  0x58   : > { %s392_s24 = scalar_lea.vmem %s391_s23, 512  ;;  %p393_p13 = scmp.lt.s32.totalorder %s195_s16, %s391_s23 }
  0x59   : > { %p388_p7 = pnand %p387_p6, %p295_p0  ;;  %p394_p1 = scmp.lt.s32.totalorder %s392_s24, %s386_s21 }
  0x5b   : > { %p389_p10 = pneg %p388_p7  ;;  %p395_p2 = por %p394_p1, %p393_p13 }
  0x5d   : > { %p396_p4 = pnand %p395_p2, %p389_p10 }
  0x5f   : > { %399 = shalt.err (!%p396_p4)
}
  0x60   : > { %s400_s9 = scalar_lea.hbm %s604_s15, %s594_s5  ;;  %s404_s30 = scalar_lea.hbm %s652_s1, 384 }
  0x61   : > { %p401_p12 = scmp.ne.s32.totalorder %s604_s15, %s400_s9  ;;  %p405_p8 = scmp.lt.u32.totalorder %s604_s15, %s652_s1 }
  0x62   : > { %p406_p9 = scmp.lt.u32.totalorder %s404_s30, %s400_s9  ;;  %p408_p6 = scmp.lt.u32.totalorder %s400_s9, %s604_s15 }
  0x63   : > { %p402_p3 = pnand %p401_p12, %p295_p0 }
  0x64   : > { %p407_p11 = por %p406_p9, %p405_p8 }
  0x65   : > { %p403_p5 = pneg %p402_p3 }
  0x66   : > { %p409_p7 = por %p408_p6, %p407_p11 }
  0x68   : > { %p410_p10 = pnand %p409_p7, %p403_p5 }
  0x6a   : > { %413 = shalt.err (!%p410_p10)
}
  0x6b   : > { %197 = dma.vmem_to_hbm [thread:$0]  (%p295_p0), %s195_s16, %s594_s5, %s604_s15, %s172_s27  }
  0x6c PF: > { %s206_s3 = sand.u32 1, %s448_s6   ;;  %p660_p13 = scmp.ne.s32.totalorder %s657_s20, 0 }
  0x6d   : > { %p661_p1 = scmp.ge.s32.totalorder %s468_s11, 2  ;;  %s207_s4 = scalar_lea.sflag [#allocation4], %s206_s3 }
  0x6f   : > { %p306_p2 = pnand %p661_p1, %p660_p13 }
  0x71   : > { %443 = dma.done.wait (!%p306_p2), %s207_s4, 256  }
  0x72   : > { %445 = vsyncadd (!%p306_p2), %s207_s4, 4294967040  ;;  %s17_s11 = sadd.s32 1, %s468_s11   ;;  %s662_s6 = smov %s452_s7 }
  0x73   : > { %p14_p4 = scmp.ge.s32.totalorder %s17_s11, 4   ;;  %s663_s7 = smov %s456_s8 }
  0x74   : > { %s664_s8 = smov %s534_s19  ;;  %s665_s9 = smov %s464_s10 }
  0x75   : > { %s666_s10 = smov %s668_s14  ;;  %16 = sbr.rel (!%p14_p4) target bundleno = 6 (0x6), region = 69 }
  0x7c   :  { %212 = vsyncpa [#allocation3], 1 }
  0x7d   :  { %214 = vsyncpa [#allocation3 + $0x1], 1 }
  0x7e   :  { %215 = vsyncpa [#allocation4], 1 }
  0x7f   :  { %217 = vsyncpa [#allocation4 + $0x1], 1 }

</bundles_post_ra>
